<compile_context>
chip_gen: v6e
topology: v6e:2x2x1
jax: 0.10.0
libtpu: 0.0.40
codegen_flags: <defaults>
</compile_context>

<pallas_src>
import functools

import jax
import jax.numpy as jnp
from jax.experimental import pallas as pl
from jax.experimental.pallas import tpu as pltpu


def _round_up(x, m):
    return ((x + m - 1) // m) * m


def _pick_chunk(T, max_chunk=16):
    """Largest divisor of T that is <= max_chunk (host-side, static)."""
    c = min(T, max_chunk)
    while T % c:
        c -= 1
    return c


# ----------------------------------------------------------------------------
# Kernel: one grid step == one chunk of `chunk` RNN time steps.
# ----------------------------------------------------------------------------
def _rnn_chunk_kernel(h0_ref, x_ref, wx_ref, wh_ref, b_ref,
                      out_ref, hfin_ref,
                      *, chunk, batch, hidden_pad):
    """
    h0_ref  : (B, Hpad)     initial hidden, pre-padded (pad lanes zero), f32
    x_ref   : (Tc*B, I)     inputs for this chunk (compute dtype)
    wx_ref  : (I, Npad)     packed [i2h | i2o] weights, input rows (resident)
    wh_ref  : (Hpad, Npad)  packed [i2h | i2o] weights, hidden rows (resident)
    b_ref   : (1, Npad)     packed bias; output-pad lanes hold -1e30 (mask)
    out_ref : (Tc*B, Opad)  log-softmax outputs for this chunk, f32
    hfin_ref: (B, Hpad)     resident hidden-state carry / final hidden, f32
    """
    c = pl.program_id(0)
    cdt = wx_ref.dtype

    # Chunk 0: seed the resident carry with the pre-padded initial hidden.
    @pl.when(c == 0)
    def _():
        hfin_ref[...] = h0_ref[...]

    # Hoisted, non-recurrent input projection for the whole chunk (one MXU
    # matmul with M = Tc*B).  The output-pad mask lives in the bias, so no
    # per-step iota/where is needed on the serial path.
    xz = (jnp.dot(x_ref[...].astype(cdt), wx_ref[...],
                  preferred_element_type=jnp.float32)
          + b_ref[...])                                  # (Tc*B, Npad) f32

    h = hfin_ref[...]                                    # (B, Hpad) f32
    wh = wh_ref[...]

    # Fully static (unrolled) inner loop: only the recurrent
    # (B,Hpad)@(Hpad,Npad) matmul + log-softmax sit on the serial chain.
    for t in range(chunk):
        z = xz[t * batch:(t + 1) * batch, :] + jnp.dot(
            h.astype(cdt), wh, preferred_element_type=jnp.float32)
        h = z[:, :hidden_pad]            # hidden-pad lanes stay exactly 0
        logits = z[:, hidden_pad:]       # output-pad lanes are -1e30 (masked)
        m = jnp.max(logits, axis=1, keepdims=True)
        shifted = logits - m
        lse = jnp.log(jnp.sum(jnp.exp(shifted), axis=1, keepdims=True))
        out_ref[pl.ds(t * batch, batch), :] = (shifted - lse).astype(out_ref.dtype)

    # Carry the hidden state in the resident output block (constant index_map
    # => written back to HBM exactly once, at grid end).
    hfin_ref[...] = h


# ----------------------------------------------------------------------------
# Parameter prep (one-time, outside the hot forward path)
# ----------------------------------------------------------------------------
def init_params(key, input_size, hidden_size, output_size):
    """Matches nn.Linear's uniform(-1/sqrt(fan_in), 1/sqrt(fan_in)) init."""
    fan_in = input_size + hidden_size
    bound = 1.0 / jnp.sqrt(jnp.float32(fan_in))
    k1, k2, k3, k4 = jax.random.split(key, 4)
    w_ih = jax.random.uniform(k1, (hidden_size, fan_in), jnp.float32, -bound, bound)
    b_ih = jax.random.uniform(k2, (hidden_size,), jnp.float32, -bound, bound)
    w_io = jax.random.uniform(k3, (output_size, fan_in), jnp.float32, -bound, bound)
    b_io = jax.random.uniform(k4, (output_size,), jnp.float32, -bound, bound)
    return w_ih, b_ih, w_io, b_io


def prepare_params(params, input_size, hidden_size, output_size,
                   compute_dtype=jnp.bfloat16):
    """Pre-transpose, pack and lane-pad the two Linear layers (done once).

    Returns (wx, wh, b):
      wx: (I,    Hpad+Opad)  input-row half of the packed weight (compute dtype)
      wh: (Hpad, Hpad+Opad)  hidden-row half (rows H..Hpad zero, compute dtype)
      b : (1,    Hpad+Opad)  packed bias, f32; output-pad lanes = -1e30 (mask),
                             hidden-pad lanes = 0 (so carried pad lanes stay 0)
    Columns [0,Hpad) are i2h, [Hpad, Hpad+Opad) are i2o.
    """
    w_ih, b_ih, w_io, b_io = params
    hpad = _round_up(hidden_size, 128)
    opad = _round_up(output_size, 128)
    npad = hpad + opad

    w_ih_t = w_ih.T        # (I+H, H)
    w_io_t = w_io.T        # (I+H, O)

    wx = jnp.zeros((input_size, npad), jnp.float32)
    wx = wx.at[:, :hidden_size].set(w_ih_t[:input_size])
    wx = wx.at[:, hpad:hpad + output_size].set(w_io_t[:input_size])

    wh = jnp.zeros((hpad, npad), jnp.float32)
    wh = wh.at[:hidden_size, :hidden_size].set(w_ih_t[input_size:])
    wh = wh.at[:hidden_size, hpad:hpad + output_size].set(w_io_t[input_size:])

    b = jnp.zeros((1, npad), jnp.float32)
    b = b.at[0, :hidden_size].set(b_ih)
    b = b.at[0, hpad:hpad + output_size].set(b_io)
    b = b.at[0, hpad + output_size:].set(-1e30)   # baked-in output-pad mask

    return wx.astype(compute_dtype), wh.astype(compute_dtype), b


# ----------------------------------------------------------------------------
# Forward wrappers
# ----------------------------------------------------------------------------
def rnn_forward_sequence(xs, h0, packed, *, hidden_size, output_size):
    """Run the whole recurrence in one pallas_call (grid over time chunks).

    xs: (T, B, I), h0: (B, H). Returns (log_probs (T, B, O), h_T (B, H)).
    """
    wx, wh, b = packed
    T, B, I = xs.shape
    hpad = wh.shape[0]
    npad = wx.shape[1]
    opad = npad - hpad

    chunk = _pick_chunk(T)
    n_chunks = T // chunk

    # Time-flattened (sublane-dense) input/output layout; pre-padded h0 so the
    # carry init is a full-block copy.
    x2 = xs.reshape(T * B, I).astype(wx.dtype)
    h0p = jnp.zeros((B, hpad), jnp.float32).at[:, :h0.shape[1]].set(
        h0.astype(jnp.float32))

    kernel = functools.partial(_rnn_chunk_kernel,
                               chunk=chunk, batch=B, hidden_pad=hpad)

    cost = pl.CostEstimate(
        flops=int(2 * T * B * (I + hpad) * npad),
        transcendentals=int(T * B * opad),
        bytes_accessed=int(x2.size * x2.dtype.itemsize
                           + wx.size * wx.dtype.itemsize
                           + wh.size * wh.dtype.itemsize
                           + 4 * (b.size + h0p.size + T * B * opad + B * hpad)),
    )

    outs_pad, hfin_pad = pl.pallas_call(
        kernel,
        out_shape=(
            jax.ShapeDtypeStruct((T * B, opad), jnp.float32),
            jax.ShapeDtypeStruct((B, hpad), jnp.float32),
        ),
        grid=(n_chunks,),
        in_specs=[
            pl.BlockSpec((B, hpad), lambda c: (0, 0)),          # h0 (resident)
            pl.BlockSpec((chunk * B, I), lambda c: (c, 0)),     # per-chunk x
            pl.BlockSpec((I, npad), lambda c: (0, 0)),          # wx (resident)
            pl.BlockSpec((hpad, npad), lambda c: (0, 0)),       # wh (resident)
            pl.BlockSpec((1, npad), lambda c: (0, 0)),          # bias (resident)
        ],
        out_specs=(
            pl.BlockSpec((chunk * B, opad), lambda c: (c, 0)),  # per-chunk out
            pl.BlockSpec((B, hpad), lambda c: (0, 0)),          # hidden carry
        ),
        compiler_params=pltpu.CompilerParams(
            # Time-chunk axis carries the recurrence -> "arbitrary".
            dimension_semantics=("arbitrary",),
        ),
        cost_estimate=cost,
    )(h0p, x2, wx, wh, b)

    outs = outs_pad.reshape(T, B, opad)[..., :output_size]
    return outs, hfin_pad[:, :hidden_size]


def rnn_forward(input_tensor, hidden_tensor, packed, *, hidden_size, output_size):
    """Single-step forward matching RNN.forward(input, hidden) -> (out, hidden)."""
    outs, h = rnn_forward_sequence(input_tensor[None], hidden_tensor, packed,
                                   hidden_size=hidden_size,
                                   output_size=output_size)
    return outs[0], h


# ----------------------------------------------------------------------------
# Pure-JAX references
# ----------------------------------------------------------------------------
def rnn_forward_ref(x, h, params):
    w_ih, b_ih, w_io, b_io = params
    combined = jnp.concatenate([x, h], axis=1)
    hid = combined @ w_ih.T + b_ih
    out = jax.nn.log_softmax(combined @ w_io.T + b_io, axis=1)
    return out, hid


def rnn_sequence_ref(xs, h0, params):
    def step(h, x):
        out, h_new = rnn_forward_ref(x, h, params)
        return h_new, out
    h_t, outs = jax.lax.scan(step, h0, xs)
    return outs, h_t


# ----------------------------------------------------------------------------
if __name__ == "__main__":
    input_size = 16
    hidden_size = 32
    output_size = 8
    batch = 2
    seq_len = 8

    key = jax.random.PRNGKey(0)
    kx, kx2, kp = jax.random.split(key, 3)

    xs = jax.random.normal(kx, (seq_len, batch, input_size), jnp.float32)
    h0 = jnp.zeros((batch, hidden_size), jnp.float32)   # init_hidden()-style
    params = init_params(kp, input_size, hidden_size, output_size)

    # ---------- exactness check: f32 compute path ---------------------------
    packed_f32 = prepare_params(params, input_size, hidden_size, output_size,
                                compute_dtype=jnp.float32)

    # Single step (matches RNN.forward semantics exactly).
    out1, hid1 = rnn_forward(xs[0], h0, packed_f32,
                             hidden_size=hidden_size, output_size=output_size)
    out1, hid1 = jax.block_until_ready((out1, hid1))
    out1_ref, hid1_ref = rnn_forward_ref(xs[0], h0, params)
    assert jnp.allclose(out1, out1_ref, atol=1e-4, rtol=1e-4)
    assert jnp.allclose(hid1, hid1_ref, atol=1e-4, rtol=1e-4)

    # Full recurrence, T=8 -> a single grid step (chunked time axis).
    outs, h_t = rnn_forward_sequence(xs, h0, packed_f32,
                                     hidden_size=hidden_size,
                                     output_size=output_size)
    outs, h_t = jax.block_until_ready((outs, h_t))
    outs_ref, h_t_ref = rnn_sequence_ref(xs, h0, params)
    assert jnp.allclose(outs, outs_ref, atol=1e-4, rtol=1e-4)
    assert jnp.allclose(h_t, h_t_ref, atol=1e-4, rtol=1e-4)

    # Longer sequence -> multiple chunks, exercises the cross-chunk carry.
    T_long = 32
    xs_long = jax.random.normal(kx2, (T_long, batch, input_size), jnp.float32)
    outs_l, h_t_l = rnn_forward_sequence(xs_long, h0, packed_f32,
                                         hidden_size=hidden_size,
                                         output_size=output_size)
    outs_l, h_t_l = jax.block_until_ready((outs_l, h_t_l))
    outs_l_ref, h_t_l_ref = rnn_sequence_ref(xs_long, h0, params)
    assert jnp.allclose(outs_l, outs_l_ref, atol=2e-3, rtol=2e-3)
    assert jnp.allclose(h_t_l, h_t_l_ref, atol=2e-3, rtol=2e-3)

    # ---------- perf path: bf16 weights/activations, f32 accumulation -------
    packed_bf16 = prepare_params(params, input_size, hidden_size, output_size,
                                 compute_dtype=jnp.bfloat16)
    outs_b, h_t_b = rnn_forward_sequence(xs, h0, packed_bf16,
                                         hidden_size=hidden_size,
                                         output_size=output_size)
    outs_b, h_t_b = jax.block_until_ready((outs_b, h_t_b))
    assert jnp.allclose(outs_b, outs_ref, atol=1e-1, rtol=1e-1)
    assert jnp.allclose(h_t_b, h_t_ref, atol=1e-1, rtol=1e-1)

    print("KERNEL_OK")
</pallas_src>

<mosaic_0001>
module attributes {stable_mosaic.version = 11 : i64} {
  func.func @_rnn_chunk_kernel(%arg0: i32, %arg1: memref<2x128xf32, #tpu.memory_space<vmem>>, %arg2: memref<2x16xf32, #tpu.memory_space<vmem>>, %arg3: memref<16x256xf32, #tpu.memory_space<vmem>>, %arg4: memref<128x256xf32, #tpu.memory_space<vmem>>, %arg5: memref<1x256xf32, #tpu.memory_space<vmem>>, %arg6: memref<2x128xf32, #tpu.memory_space<vmem>>, %arg7: memref<2x128xf32, #tpu.memory_space<vmem>>) attributes {dimension_semantics = [#tpu.dimension_semantics<arbitrary>], iteration_bounds = array<i64: 1>, scalar_prefetch = 0 : i64, scratch_operands = 0 : i64, tpu.core_type = #tpu.core_type<tc>, window_params = [{pipeline_mode = #tpu.pipeline_mode<synchronous>, transform_indices = @transform_0, window_bounds = array<i64: 2, 128>}, {transform_indices = @transform_1, window_bounds = array<i64: 2, 16>}, {pipeline_mode = #tpu.pipeline_mode<synchronous>, transform_indices = @transform_2, window_bounds = array<i64: 16, 256>}, {pipeline_mode = #tpu.pipeline_mode<synchronous>, transform_indices = @transform_3, window_bounds = array<i64: 128, 256>}, {pipeline_mode = #tpu.pipeline_mode<synchronous>, transform_indices = @transform_4, window_bounds = array<i64: 1, 256>}, {transform_indices = @transform_5, window_bounds = array<i64: 2, 128>}, {pipeline_mode = #tpu.pipeline_mode<synchronous>, transform_indices = @transform_6, window_bounds = array<i64: 2, 128>}]} {
    %c0_i32 = arith.constant 0 : i32
    %0 = arith.cmpi eq, %arg0, %c0_i32 : i32
    %1 = arith.extui %0 : i1 to i32
    %c0_i32_0 = arith.constant 0 : i32
    %2 = arith.cmpi ne, %1, %c0_i32_0 : i32
    scf.if %2 {
      %c0_17 = arith.constant 0 : index
      %c0_18 = arith.constant 0 : index
      %27 = vector.load %arg1[%c0_17, %c0_18] : memref<2x128xf32, #tpu.memory_space<vmem>>, vector<2x128xf32>
      %c0_19 = arith.constant 0 : index
      %c0_20 = arith.constant 0 : index
      %28 = vector.load %arg7[%c0_19, %c0_20] : memref<2x128xf32, #tpu.memory_space<vmem>>, vector<2x128xf32>
      tpu.vector_store %arg7[%c0_19, %c0_20], %27 {strides = array<i32>} : memref<2x128xf32, #tpu.memory_space<vmem>>, vector<2x128xf32>,
    } else {
    }
    %c0 = arith.constant 0 : index
    %c0_1 = arith.constant 0 : index
    %3 = vector.load %arg2[%c0, %c0_1] : memref<2x16xf32, #tpu.memory_space<vmem>>, vector<2x16xf32>
    %c0_2 = arith.constant 0 : index
    %c0_3 = arith.constant 0 : index
    %4 = vector.load %arg3[%c0_2, %c0_3] : memref<16x256xf32, #tpu.memory_space<vmem>>, vector<16x256xf32>
    %cst = arith.constant dense<0.000000e+00> : vector<2x256xf32>
    %5 = tpu.matmul %3, %4, %cst {dimension_numbers = #tpu.dot_dimension_numbers<[1], [0], [0], [1], [0, 0, 1, 1], [], []>} : vector<2x16xf32>, vector<16x256xf32>, vector<2x256xf32> -> vector<2x256xf32>
    %c0_4 = arith.constant 0 : index
    %c0_5 = arith.constant 0 : index
    %6 = vector.load %arg5[%c0_4, %c0_5] : memref<1x256xf32, #tpu.memory_space<vmem>>, vector<1x256xf32>
    %7 = vector.broadcast %6 : vector<1x256xf32> to vector<2x256xf32>
    %8 = arith.addf %5, %7 : vector<2x256xf32>
    %c0_6 = arith.constant 0 : index
    %c0_7 = arith.constant 0 : index
    %9 = vector.load %arg7[%c0_6, %c0_7] : memref<2x128xf32, #tpu.memory_space<vmem>>, vector<2x128xf32>
    %c0_8 = arith.constant 0 : index
    %c0_9 = arith.constant 0 : index
    %10 = vector.load %arg4[%c0_8, %c0_9] : memref<128x256xf32, #tpu.memory_space<vmem>>, vector<128x256xf32>
    %cst_10 = arith.constant dense<0.000000e+00> : vector<2x256xf32>
    %11 = tpu.matmul %9, %10, %cst_10 {dimension_numbers = #tpu.dot_dimension_numbers<[1], [0], [0], [1], [0, 0, 1, 1], [], []>} : vector<2x128xf32>, vector<128x256xf32>, vector<2x256xf32> -> vector<2x256xf32>
    %12 = arith.addf %8, %11 : vector<2x256xf32>
    %13 = vector.extract_strided_slice %12 {offsets = [0, 0], sizes = [2, 128], strides = [1, 1]} : vector<2x256xf32> to vector<2x128xf32>
    %14 = vector.extract_strided_slice %12 {offsets = [0, 128], sizes = [2, 128], strides = [1, 1]} : vector<2x256xf32> to vector<2x128xf32>
    %cst_11 = arith.constant dense<0xFF800000> : vector<2xf32>
    %15 = vector.multi_reduction <maximumf>, %14, %cst_11 [1] : vector<2x128xf32> to vector<2xf32>
    %16 = vector.shape_cast %15 : vector<2xf32> to vector<2x1xf32>
    %17 = vector.broadcast %16 : vector<2x1xf32> to vector<2x128xf32>
    %18 = arith.subf %14, %17 : vector<2x128xf32>
    %19 = math.exp %18 : vector<2x128xf32>
    %cst_12 = arith.constant dense<0.000000e+00> : vector<2xf32>
    %20 = vector.multi_reduction <add>, %19, %cst_12 [1] : vector<2x128xf32> to vector<2xf32>
    %21 = vector.shape_cast %20 : vector<2xf32> to vector<2x1xf32>
    %22 = math.log %21 : vector<2x1xf32>
    %23 = vector.broadcast %22 : vector<2x1xf32> to vector<2x128xf32>
    %24 = arith.subf %18, %23 : vector<2x128xf32>
    %c0_13 = arith.constant 0 : index
    %c0_14 = arith.constant 0 : index
    %25 = vector.load %arg6[%c0_13, %c0_14] : memref<2x128xf32, #tpu.memory_space<vmem>>, vector<2x128xf32>
    tpu.vector_store %arg6[%c0_13, %c0_14], %24 {strides = array<i32>} : memref<2x128xf32, #tpu.memory_space<vmem>>, vector<2x128xf32>,
    %c0_15 = arith.constant 0 : index
    %c0_16 = arith.constant 0 : index
    %26 = vector.load %arg7[%c0_15, %c0_16] : memref<2x128xf32, #tpu.memory_space<vmem>>, vector<2x128xf32>
    tpu.vector_store %arg7[%c0_15, %c0_16], %13 {strides = array<i32>} : memref<2x128xf32, #tpu.memory_space<vmem>>, vector<2x128xf32>,
    return
  }
  func.func @transform_0(%arg0: i32) -> (i32, i32) {
    %c0_i32 = arith.constant 0 : i32
    %c0_i32_0 = arith.constant 0 : i32
    %c0_i32_1 = arith.constant 0 : i32
    return %c0_i32, %c0_i32_0 : i32, i32
  }
  func.func @transform_1(%arg0: i32) -> (i32, i32) {
    %c0_i32 = arith.constant 0 : i32
    %c0_i32_0 = arith.constant 0 : i32
    return %arg0, %c0_i32 : i32, i32
  }
  func.func @transform_2(%arg0: i32) -> (i32, i32) {
    %c0_i32 = arith.constant 0 : i32
    %c0_i32_0 = arith.constant 0 : i32
    %c0_i32_1 = arith.constant 0 : i32
    return %c0_i32, %c0_i32_0 : i32, i32
  }
  func.func @transform_3(%arg0: i32) -> (i32, i32) {
    %c0_i32 = arith.constant 0 : i32
    %c0_i32_0 = arith.constant 0 : i32
    %c0_i32_1 = arith.constant 0 : i32
    return %c0_i32, %c0_i32_0 : i32, i32
  }
  func.func @transform_4(%arg0: i32) -> (i32, i32) {
    %c0_i32 = arith.constant 0 : i32
    %c0_i32_0 = arith.constant 0 : i32
    %c0_i32_1 = arith.constant 0 : i32
    return %c0_i32, %c0_i32_0 : i32, i32
  }
  func.func @transform_5(%arg0: i32) -> (i32, i32) {
    %c0_i32 = arith.constant 0 : i32
    %c0_i32_0 = arith.constant 0 : i32
    return %arg0, %c0_i32 : i32, i32
  }
  func.func @transform_6(%arg0: i32) -> (i32, i32) {
    %c0_i32 = arith.constant 0 : i32
    %c0_i32_0 = arith.constant 0 : i32
    %c0_i32_1 = arith.constant 0 : i32
    return %c0_i32, %c0_i32_0 : i32, i32
  }
}

</mosaic_0001>

<bundles_post_ra>
// kernel: tpu_custom_call.1
= control target key start
LH: loop header
LB: loop body
LE: loop exit
PB: predicated region body
PF: predicated region fallthrough
CT: control target
= control target key end

     0   :  { %12 = vsyncpa [#allocation3], 0  ;;  %s534_s0 = inlined_call_operand.hbm [shape: f32[2,128], index: 0, kind: input, shape index: {}]   ;;  %s535_s1 = inlined_call_operand.hbm [shape: f32[2,16], index: 1, kind: input, shape index: {}]   ;;  %s536_s2 = inlined_call_operand.hbm [shape: f32[16,256], index: 2, kind: input, shape index: {}]   ;;  %s537_s3 = inlined_call_operand.hbm [shape: f32[128,256], index: 3, kind: input, shape index: {}]   ;;  %s538_s4 = inlined_call_operand.vmem [shape: f32[1,256], index: 4, kind: input, shape index: {}]   ;;  %s539_s5 = inlined_call_operand.hbm [shape: f32[2,128], index: 5, kind: output, shape index: {0}]   ;;  %s540_s6 = inlined_call_operand.hbm [shape: f32[2,128], index: 6, kind: output, shape index: {1}]  }
   0x1   :  { %13 = vsyncpa [#allocation6], 0 }
   0x2   :  { %14 = vsyncpa [#allocation9], 0 }
   0x3   :  { %15 = vsyncpa [#allocation4], 0 }
   0x4   :  { %16 = vsyncpa [#allocation12], 0  ;;  %s469_s21 = smov [#allocation5]   ;;  %s470_s23 = smov [#allocation2]  }
   0x5   :  { %s33_s22 = sshll.u32 %s469_s21, 4  ;;  %s23_s24 = sshll.u32 %s470_s23, 4  ;;  %s34_s22 = int_to_ptr.vmem [resolvable:$true] %s33_s22  ;;  %s24_s24 = int_to_ptr.vmem [resolvable:$true] %s23_s24 }
   0x6   :  { %s347_s25 = scalar_lea.vmem %s34_s22, 32  ;;  %p352_p1 = scmp.lt.s32.totalorder %s34_s22, %s34_s22 }
   0x7   :  { %p348_p0 = scmp.ne.s32.totalorder %s34_s22, %s347_s25  ;;  %p353_p2 = scmp.lt.s32.totalorder %s347_s25, %s347_s25 }
   0x9   :  { %p354_p3 = por %p353_p2, %p352_p1 }
   0xb   :  { %p355_p4 = pnand %p354_p3, %p348_p0 }
   0xd   :  { %358 = shalt.err (!%p355_p4)
}
   0xe   :  { %36 = dma.hbm_to_vmem [thread:$0]  %s535_s1, 32, %s34_s22, [#allocation6]  }
   0xf   :  { %s367_s28 = scalar_lea.vmem %s24_s24, 32  ;;  %p372_p6 = scmp.lt.s32.totalorder %s24_s24, %s24_s24 }
  0x10   :  { %p368_p5 = scmp.ne.s32.totalorder %s24_s24, %s367_s28  ;;  %p373_p7 = scmp.lt.s32.totalorder %s367_s28, %s367_s28 }
  0x12   :  { %p374_p8 = por %p373_p7, %p372_p6 }
  0x14   :  { %p375_p9 = pnand %p374_p8, %p368_p5 }
  0x16   :  { %378 = shalt.err (!%p375_p9)
}
  0x17   :  { %26 = dma.hbm_to_vmem [thread:$0]  %s534_s0, 32, %s24_s24, [#allocation3]  }
  0x18   :  { %s471_s7 = smov [#allocation7]  }
  0x19   :  { %s42_s8 = sshll.u32 %s471_s7, 4  ;;  %s43_s8 = int_to_ptr.vmem [resolvable:$true] %s42_s8 }
  0x1a   :  { %s387_s9 = scalar_lea.vmem %s43_s8, 512  ;;  %p392_p11 = scmp.lt.s32.totalorder %s43_s8, %s43_s8 }
  0x1b   :  { %p388_p10 = scmp.ne.s32.totalorder %s43_s8, %s387_s9  ;;  %p393_p12 = scmp.lt.s32.totalorder %s387_s9, %s387_s9 }
  0x1d   :  { %p394_p13 = por %p393_p12, %p392_p11 }
  0x1f   :  { %p395_p0 = pnand %p394_p13, %p388_p10 }
  0x21   :  { %398 = shalt.err (!%p395_p0)
}
  0x22   :  { %s472_s1 = smov 256   ;;  %s473_s10 = smov 16  }
  0x23   :  { %48 = dma.hbm_to_vmem [thread:$0]  %s536_s2, 512, %s43_s8, [#allocation6], %s472_s1, %s472_s1, %s473_s10  }
  0x24   :  { %s474_s13 = smov [#allocation8]  }
  0x25   :  { %s54_s14 = sshll.u32 %s474_s13, 4  ;;  %s55_s14 = int_to_ptr.vmem [resolvable:$true] %s54_s14 }
  0x26   :  { %s407_s0 = scalar_lea.vmem %s55_s14, 4096  ;;  %p412_p2 = scmp.lt.s32.totalorder %s55_s14, %s55_s14 }
  0x27   :  { %p408_p1 = scmp.ne.s32.totalorder %s55_s14, %s407_s0  ;;  %p413_p3 = scmp.lt.s32.totalorder %s407_s0, %s407_s0 }
  0x29   :  { %p414_p4 = por %p413_p3, %p412_p2 }
  0x2b   :  { %p415_p5 = pnand %p414_p4, %p408_p1 }
  0x2d   :  { %418 = shalt.err (!%p415_p5)
}
  0x2e   :  { %60 = dma.hbm_to_vmem [thread:$0]  %s537_s3, 4096, %s55_s14, [#allocation9], %s472_s1, %s472_s1, %s473_s10  }
  0x2f   :  { %459 = dma.done.wait [#allocation3], 32  }
  0x30   :  { %460 = vsyncadd [#allocation3], 4294967264 }
  0x31   :  { %461 = dma.done.wait [#allocation6], 544  }
  0x32   :  { %462 = vsyncadd [#allocation6], 4294966752 }
  0x33   :  { %463 = dma.done.wait [#allocation9], 4096  }
  0x34   :  { %464 = vsyncadd [#allocation9], 4294963200  ;;  %v475_v0 = vmov 0.0   ;;  %v205_v1 = vld [vmem:[#allocation8 + $0xf8] sm:$0xff]  ;;  %v204_v2 = vld [vmem:[#allocation8 + $0xf0] sm:$0xff]  ;;  %vm98_vm0 = vcmask 130048   ;;  %v88_v40 = vlaneseq }
  0x35   :  { %166 = vmatprep.mubr.f32.mxu0 %v475_v0  ;;  %270 = vmatprep.mubr.f32.mxu1 %v475_v0  ;;  %v203_v3 = vld [vmem:[#allocation8 + $0xe8] sm:$0xff]  ;;  %v202_v4 = vld [vmem:[#allocation8 + $0xe0] sm:$0xff]  ;;  %v201_v5 = vld [vmem:[#allocation8 + $0xd8] sm:$0xff]  ;;  %vm279_vm1 = vcmask 1041408  }
  0x36   :  { %206 = vmatprep.subr.mxu1 %v205_v1  ;;  %v200_v6 = vld [vmem:[#allocation8 + $0xd0] sm:$0xff]  ;;  %v199_v7 = vld [vmem:[#allocation8 + $0xc8] sm:$0xff]  ;;  %v198_v8 = vld [vmem:[#allocation8 + $0xc0] sm:$0xff]  ;;  %v89_v41 = vshrl.u32 %v88_v40, 7 }
  0x37   :  { %207 = vmatpush1.msra.mxu1 %v204_v2  ;;  %v197_v9 = vld [vmem:[#allocation8 + $0xb8] sm:$0xff]  ;;  %v196_v10 = vld [vmem:[#allocation8 + $0xb0] sm:$0xff]  ;;  %v195_v11 = vld [vmem:[#allocation8 + $0xa8] sm:$0xff] }
  0x38   :  { %208 = vmatprep.subr.mxu1 %v203_v3  ;;  %v85_v12 = vld [vmem:[#allocation7 + $0x18] sm:$0xff]  ;;  %v84_v13 = vld [vmem:[#allocation7 + $0x10] sm:$0xff]  ;;  %v194_v14 = vld [vmem:[#allocation8 + $0xa0] sm:$0xff]  ;;  %v90_v42 = vsub.s32 0, %v89_v41  ;;  %v94_v45 = vsub.s32 1, %v89_v41 }
  0x39   :  { %209 = vmatpush1.msra.mxu1 %v202_v4  ;;  %130 = vmatprep.subr.mxu0 %v85_v12  ;;  %v83_v15 = vld [vmem:[#allocation7 + $0x8] sm:$0xff]  ;;  %v193_v16 = vld [vmem:[#allocation8 + $0x98] sm:$0xff]  ;;  %v82_v17 = vld [vmem:[#allocation7] sm:$0xff] }
  0x3a   :  { %210 = vmatprep.subr.mxu1 %v201_v5  ;;  %131 = vmatpush1.msra.mxu0 %v84_v13  ;;  %v81_v18 = vld [vmem:[#allocation5] sm:$0x3]  ;;  %v192_v19 = vld [vmem:[#allocation8 + $0x90] sm:$0xff]  ;;  %v191_v20 = vld [vmem:[#allocation8 + $0x88] sm:$0xff] }
  0x3b   :  { %211 = vmatpush1.msra.mxu1 %v200_v6  ;;  %132 = vmatprep.subr.mxu0 %v83_v15  ;;  %v79_v21 = vld [vmem:[#allocation2] sm:$0x3]  ;;  %v190_v22 = vld [vmem:[#allocation8 + $0x80] sm:$0xff]  ;;  %v188_v24 = vld [vmem:[#allocation8 + $0x70] sm:$0xff] }
  0x3c   :  { %212 = vmatprep.subr.mxu1 %v199_v7  ;;  %133 = vmatpush1.msra.mxu0 %v82_v17  ;;  %80 = vst [vmem:[#allocation11] sm:$0x3] %v79_v21  ;;  %v189_v23 = vld [vmem:[#allocation8 + $0x78] sm:$0xff]  ;;  %v187_v25 = vld [vmem:[#allocation8 + $0x68] sm:$0xff]  ;;  %v186_v26 = vld [vmem:[#allocation8 + $0x60] sm:$0xff] }
  0x3d   :  { %213 = vmatpush1.msra.mxu1 %v198_v8  ;;  %325 = vmatmul.mubr.msk.f32.vlgmr.msra.gmra.mxu0 %vm98_vm0, %v81_v18  ;;  %v185_v27 = vld [vmem:[#allocation8 + $0x58] sm:$0xff]  ;;  %v184_v28 = vld [vmem:[#allocation8 + $0x50] sm:$0xff]  ;;  %v183_v29 = vld [vmem:[#allocation8 + $0x48] sm:$0xff] }
  0x3e   :  { %214 = vmatprep.subr.mxu1 %v197_v9  ;;  %v182_v30 = vld [vmem:[#allocation8 + $0x40] sm:$0xff]  ;;  %v181_v31 = vld [vmem:[#allocation8 + $0x38] sm:$0xff]  ;;  %v180_v32 = vld [vmem:[#allocation8 + $0x30] sm:$0xff] }
  0x3f   :  { %215 = vmatpush1.msra.mxu1 %v196_v10  ;;  %v179_v33 = vld [vmem:[#allocation8 + $0x28] sm:$0xff]  ;;  %v178_v34 = vld [vmem:[#allocation8 + $0x20] sm:$0xff]  ;;  %v177_v35 = vld [vmem:[#allocation8 + $0x18] sm:$0xff] }
  0x40   :  { %216 = vmatprep.subr.mxu1 %v195_v11  ;;  %v176_v36 = vld [vmem:[#allocation8 + $0x10] sm:$0xff]  ;;  %v175_v37 = vld [vmem:[#allocation8 + $0x8] sm:$0xff]  ;;  %v174_v38 = vld [vmem:[#allocation8] sm:$0xff] }
  0x41   :  { %217 = vmatpush1.msra.mxu1 %v194_v14  ;;  %v86_v43 = vld [vmem:[%s538_s4] sm:$0x3]  ;;  %s476_s4 = smov [#allocation11]  }
  0x42   :  { %218 = vmatprep.subr.mxu1 %v193_v16  ;;  %v91_v44 = vrot.slane %v86_v43, %v90_v42  ;;  %v95_v48 = vrot.slane %v86_v43, %v94_v45  ;;  %s310_s17 = sshll.u32 %s476_s4, 4  ;;  %s311_s17 = int_to_ptr.vmem [resolvable:$true] %s310_s17 }
  0x43   :  { %219 = vmatpush1.msra.mxu1 %v192_v19  ;;  %v173_v39 = vld [vmem:[#allocation11] sm:$0x3]  ;;  %s419_s18 = scalar_lea.vmem %s311_s17, 32  ;;  %p424_p7 = scmp.lt.s32.totalorder %s311_s17, %s311_s17 }
  0x44   :  { %220 = vmatprep.subr.mxu1 %v191_v20  ;;  %p420_p6 = scmp.ne.s32.totalorder %s311_s17, %s419_s18  ;;  %p425_p8 = scmp.lt.s32.totalorder %s419_s18, %s419_s18 }
  0x45   :  { %221 = vmatpush1.msra.mxu1 %v190_v22 }
  0x46   :  { %222 = vmatprep.subr.mxu1 %v189_v23  ;;  %p426_p9 = por %p425_p8, %p424_p7 }
  0x47   :  { %223 = vmatpush1.msra.mxu1 %v188_v24 }
  0x48   :  { %224 = vmatprep.subr.mxu1 %v187_v25  ;;  %p427_p10 = pnand %p426_p9, %p420_p6 }
  0x49   :  { %225 = vmatpush1.msra.mxu1 %v186_v26 }
  0x4a   :  { %226 = vmatprep.subr.mxu1 %v185_v27 }
  0x4b   :  { %227 = vmatpush1.msra.mxu1 %v184_v28 }
  0x4c   :  { %228 = vmatprep.subr.mxu1 %v183_v29 }
  0x4d   :  { %229 = vmatpush1.msra.mxu1 %v182_v30 }
  0x4e   :  { %230 = vmatprep.subr.mxu1 %v181_v31 }
  0x4f   :  { %231 = vmatpush1.msra.mxu1 %v180_v32 }
  0x50   :  { %232 = vmatprep.subr.mxu1 %v179_v33 }
  0x51   :  { %233 = vmatpush1.msra.mxu1 %v178_v34 }
  0x52   :  { %234 = vmatprep.subr.mxu1 %v177_v35 }
  0x53   :  { %235 = vmatpush1.msra.mxu1 %v176_v36 }
  0x54   :  { %236 = vmatprep.subr.mxu1 %v175_v37 }
  0x55   :  { %237 = vmatpush1.msra.mxu1 %v174_v38 }
  0x56   :  { %271 = vmatmul.mubr.f32.vlgmr.msra.gmra.mxu1 %v173_v39 }
  0xfd   :  { %v168_v46 = vpop.f32.mrf.mxu0 }
  0xfe   :  { %v169_v47 = vadd.f32 %v168_v46, %v91_v44 }
  0xff   :  { %v170_v49 = vpop.f32.mrf.mxu0 }
 0x100   :  { %v171_v51 = vadd.f32 %v170_v49, %v95_v48 }
 0x116   :  { %v272_v50 = vpop.f32.mrf.mxu1 }
 0x117   :  { %v277_v52 = vadd.f32 %v272_v50, %v169_v47 }
 0x118   :  { %v274_v53 = vpop.f32.mrf.mxu1 }
 0x119   :  { %293 = vst [vmem:[#allocation11] sm:$0x3] %v277_v52  ;;  %v278_v54 = vadd.f32 %v274_v53, %v171_v51 }
 0x11b   :  { %v280_v55 = vsel %vm279_vm1, %v278_v54, -inf }
 0x11c   :  { %281 = vmax.xlane.f32.xlu0 %v280_v55 }
 0x1a5   :  { %v282_v56 = vpop.xlane.xlu0 %281 }
 0x1a6   :  { %v283_v57 = vsub.f32 %v278_v54, %v282_v56 }
 0x1a8   :  { %v284_v58 = vmul.f32 1.442695, %v283_v57 }
 0x1aa   :  { %335 = vpow2.f32 %v284_v58 }
 0x1b7   :  { %v336_v59 = vpop.eup %335 }
 0x1b8   :  { %v286_v60 = vsel %vm279_vm1, %v336_v59, 0.0 }
 0x1b9   :  { %287 = vadd.xlane.f32.xlu0 %v286_v60 }
 0x1ba   :  { %430 = shalt.err (!%p427_p10)
}
 0x1bb   :  { %313 = dma.vmem_to_hbm [thread:$0]  %s311_s17, 32, %s540_s6, [#allocation12]  }
 0x1bc   :  { %s477_s21 = smov [#allocation10]  }
 0x1bd   :  { %s300_s22 = sshll.u32 %s477_s21, 4  ;;  %s301_s22 = int_to_ptr.vmem [resolvable:$true] %s300_s22 }
 0x1be   :  { %s439_s23 = scalar_lea.vmem %s301_s22, 32  ;;  %p444_p12 = scmp.lt.s32.totalorder %s301_s22, %s301_s22 }
 0x1bf   :  { %p440_p11 = scmp.ne.s32.totalorder %s301_s22, %s439_s23  ;;  %p445_p13 = scmp.lt.s32.totalorder %s439_s23, %s439_s23 }
 0x1c1   :  { %p446_p0 = por %p445_p13, %p444_p12 }
 0x1c3   :  { %p447_p1 = pnand %p446_p0, %p440_p11 }
 0x242   :  { %v288_v61 = vpop.xlane.xlu0 %287 }
 0x243   :  { %337 = vlog2.f32 %v288_v61 }
 0x250   :  { %v338_v62 = vpop.eup %337 }
 0x251   :  { %v290_v63 = vmul.f32 0.6931472, %v338_v62 }
 0x253   :  { %v291_v0 = vsub.f32 %v283_v57, %v290_v63 }
 0x255   :  { %292 = vst [vmem:[#allocation10] sm:$0x3] %v291_v0 }
 0x256   :  { %450 = shalt.err (!%p447_p1)
}
 0x257   :  { %303 = dma.vmem_to_hbm [thread:$0]  %s301_s22, 32, %s539_s5, [#allocation4]  }
 0x258   :  { %465 = dma.done.wait [#allocation4], 32  }
 0x259   :  { %466 = vsyncadd [#allocation4], 4294967264 }
 0x25a   :  { %467 = dma.done.wait [#allocation12], 32  }
 0x25b   :  { %468 = vsyncadd [#allocation12], 4294967264 }
 0x25c   :  { %320 = vsyncpa [#allocation3], 1 }
 0x25d   :  { %321 = vsyncpa [#allocation6], 1 }
 0x25e   :  { %322 = vsyncpa [#allocation9], 1 }
 0x25f   :  { %323 = vsyncpa [#allocation4], 1 }
 0x260   :  { %324 = vsyncpa [#allocation12], 1 }

</bundles_post_ra>
